<compile_context>
chip_gen: v7x
topology: tpu7x:2x2x1
jax: 0.10.0
libtpu: 0.0.40
codegen_flags: <defaults>
</compile_context>

<pallas_src>
import numpy as np
import jax
import jax.numpy as jnp
from jax import lax
from jax.experimental import pallas as pl
from jax.experimental.pallas import tpu as pltpu

ID2TAG = {0: "B", 1: "I", 2: "O"}

HLP = 128   # hidden_size_low (100) padded to a lane-dense width
CP = 128    # class dim (3 / 2) padded to a lane-dense width for stored logits


def _round_up(n, m):
    return ((n + m - 1) // m) * m


# ----------------------- fused encode + BIO-CE kernel ------------------------

def _make_encode_kernel(t_true, num_classes, tile_t):
    def kernel(x_ref, lab_ref, w1_ref, b1_ref, wm1_ref, bm1_ref, wm2_ref, bm2_ref,
               flat_ref, logit_ref, pred_ref, loss_ref):
        i = pl.program_id(0)

        # linear_1 : (TILE_T, H) @ (H, HLP) + b        (MXU, bf16 in / f32 acc)
        x = x_ref[...]                                        # bf16 straight from HBM
        h = jnp.dot(x, w1_ref[...], preferred_element_type=jnp.float32) + b1_ref[...]
        flat_ref[...] = h.astype(flat_ref.dtype)              # bf16 lane-dense (TILE_T, 128)

        # mention_linear_no_pos : Linear -> tanh -> (Dropout=identity) -> Linear
        g = jnp.tanh(jnp.dot(h.astype(jnp.bfloat16), wm1_ref[...],
                             preferred_element_type=jnp.float32) + bm1_ref[...])
        logits = jnp.dot(g.astype(jnp.bfloat16), wm2_ref[...],
                         preferred_element_type=jnp.float32) + bm2_ref[...]
        logit_ref[...] = logits.astype(logit_ref.dtype)       # bf16 lane-dense (TILE_T, 128)

        # class mask (f32 only; -1e30 never touches bf16 storage)
        col = lax.broadcasted_iota(jnp.int32, logits.shape, 1)
        ml = jnp.where(col < num_classes, logits, jnp.float32(-1e30))
        mval = jnp.max(ml, axis=-1, keepdims=True)

        # fused argmax (first index attaining the max, like torch.argmax)
        hit = jnp.where(ml >= mval, col.astype(jnp.float32), jnp.float32(CP))
        pred_ref[...] = jnp.min(hit, axis=-1, keepdims=True).astype(jnp.int32)

        # fused CrossEntropy partial sum over the valid rows of this tile (f32)
        lse = mval + jnp.log(jnp.sum(jnp.exp(ml - mval), axis=-1, keepdims=True))
        lab = lab_ref[...]                                    # (TILE_T, 1) int32
        tgt = jnp.sum(jnp.where(col == lab, logits, 0.0), axis=-1, keepdims=True)
        row = i * tile_t + lax.broadcasted_iota(jnp.int32, (tile_t, 1), 0)
        valid = (row < t_true).astype(jnp.float32)
        tile_sum = jnp.sum((lse - tgt) * valid)
        loss_ref[...] = jnp.broadcast_to(tile_sum, loss_ref.shape)   # per-tile partial

    return kernel


def encode_forward(x_bf16, labels_np, pp, num_classes):
    """dropout(id) -> linear_1 -> mention MLP -> BIO CE + argmax, one pallas_call."""
    t, h_dim = x_bf16.shape
    tile_t = 512 if t >= 512 else _round_up(t, 8)
    tp = _round_up(t, tile_t)
    nt = tp // tile_t

    x_p = jnp.pad(x_bf16, ((0, tp - t), (0, 0)))              # bf16 in HBM
    lab_p = np.zeros((tp, 1), np.int32)
    lab_p[:t, 0] = labels_np
    lab_p = jnp.asarray(lab_p)

    def tiled(r, c):
        return pl.BlockSpec((r, c), lambda i: (i, 0))

    def resident(r, c):                 # weights: same block every step -> DMA'd once
        return pl.BlockSpec((r, c), lambda i: (0, 0))

    flat, logits, pred, loss_part = pl.pallas_call(
        _make_encode_kernel(t, num_classes, tile_t),
        out_shape=(jax.ShapeDtypeStruct((tp, HLP), jnp.bfloat16),
                   jax.ShapeDtypeStruct((tp, CP), jnp.bfloat16),
                   jax.ShapeDtypeStruct((tp, 1), jnp.int32),
                   jax.ShapeDtypeStruct((nt, 8, 128), jnp.float32)),
        grid=(nt,),
        in_specs=[tiled(tile_t, h_dim), tiled(tile_t, 1),
                  resident(h_dim, HLP), resident(1, HLP),
                  resident(HLP, HLP), resident(1, HLP),
                  resident(HLP, CP), resident(1, CP)],
        out_specs=(tiled(tile_t, HLP), tiled(tile_t, CP), tiled(tile_t, 1),
                   pl.BlockSpec((1, 8, 128), lambda i: (i, 0, 0))),
        compiler_params=pltpu.CompilerParams(
            dimension_semantics=("parallel",),                # loss is per-tile partials
            vmem_limit_bytes=32 * 1024 * 1024),
    )(x_p, lab_p, pp["lin1_w"], pp["lin1_b"],
      pp["mnp_w1"], pp["mnp_b1"], pp["mnp_w2"], pp["mnp_b2"])

    loss = jnp.sum(loss_part[:, 0, 0]) * jnp.float32(1.0 / t)
    return flat, logits, pred, loss


# -------------- fused pairwise interaction + lower-tri-CE kernel --------------

def _make_pair_kernel(m_true, num_pair_classes, tile_r):
    def kernel(emb_ref, wmul_t_ref, wadd_ref, waddt_ref, b_ref, lab_ref,
               logit_ref, loss_ref):
        r = pl.program_id(0)
        row0 = pl.multiple_of(r * tile_r, 8)

        emb_all = emb_ref[...]                                # (Mp, E) bf16, resident
        emb_t = emb_ref[pl.ds(row0, tile_r), :]               # (TR, E) bf16 row tile
        mp = emb_all.shape[0]

        # "sum" half, column form (bias folded in): s_t[i,k] = emb_t[i]·Wadd[:,k] + b[k]
        s_t = jnp.dot(emb_t, wadd_ref[...],
                      preferred_element_type=jnp.float32) + b_ref[...]      # (TR, CP)
        # "sum" half, lane form: s_lane[k,j] = emb_all[j]·Wadd[:,k]   (tiny M=8 matmul)
        s_lane = lax.dot_general(waddt_ref[...], emb_all,
                                 (((1,), (1,)), ((), ())),
                                 preferred_element_type=jnp.float32)        # (8, Mp)

        emb_all_f = emb_all.astype(jnp.float32)
        lab = lab_ref[...].astype(jnp.int32)                  # int8 in HBM -> i32 in-kernel

        slabs = []
        for k in range(num_pair_classes):                     # static, tiny (C2 = 2)
            # "product" half on the MXU: prod[i,j] = sum_d emb[i,d]*emb[j,d]*Wmul[d,k]
            rhs_k = (emb_all_f * wmul_t_ref[k:k + 1, :]).astype(jnp.bfloat16)
            prod_k = lax.dot_general(emb_t, rhs_k, (((1,), (1,)), ((), ())),
                                     preferred_element_type=jnp.float32)    # (TR, Mp)
            # row + column broadcast of s (+bias) on the VPU — no MXU/XLU needed
            out_k = prod_k + s_t[:, k:k + 1] + s_lane[k:k + 1, :]
            logit_ref[k] = out_k.astype(logit_ref.dtype)      # bf16 lane-dense slab
            slabs.append(out_k)

        # fused CrossEntropy over the lower triangle (incl. diagonal), f32.
        if num_pair_classes == 2:
            # specialized 2-class logsumexp: one exp + one log per pair
            # (argument of log is in (1,2], so plain log loses nothing material)
            a, b2 = slabs
            mx = jnp.maximum(a, b2)
            lse = mx + jnp.log(1.0 + jnp.exp(-jnp.abs(a - b2)))
            tgt = jnp.where(lab == 0, a, b2)
        else:
            mx = slabs[0]
            for s_ in slabs[1:]:
                mx = jnp.maximum(mx, s_)
            sumexp = jnp.zeros_like(mx)
            tgt = jnp.zeros_like(mx)
            for k, s_ in enumerate(slabs):
                sumexp = sumexp + jnp.exp(s_ - mx)
                tgt = tgt + jnp.where(lab == k, s_, 0.0)
            lse = mx + jnp.log(sumexp)

        row = row0 + lax.broadcasted_iota(jnp.int32, (tile_r, mp), 0)
        col = lax.broadcasted_iota(jnp.int32, (tile_r, mp), 1)
        valid = jnp.logical_and(col <= row, row < m_true).astype(jnp.float32)
        tile_sum = jnp.sum((lse - tgt) * valid)
        loss_ref[...] = jnp.broadcast_to(tile_sum, loss_ref.shape)   # per-tile partial

    return kernel


def pair_forward(emb_pad, lab_pad, pp, m_true):
    mp, e = emb_pad.shape
    c2 = int(pp["pair_wadd"].shape[1] and 2)  # output_size - 1 (always 2 here)
    c2 = 2
    tile_r = mp if mp <= 256 else 256         # mp is a multiple of tile_r by construction
    nr = mp // tile_r
    n_pairs = m_true * (m_true + 1) // 2

    def resident(shape):
        n = len(shape)
        return pl.BlockSpec(shape, lambda r, _n=n: (0,) * _n)

    logits, loss_part = pl.pallas_call(
        _make_pair_kernel(m_true, c2, tile_r),
        out_shape=(jax.ShapeDtypeStruct((c2, mp, mp), jnp.bfloat16),
                   jax.ShapeDtypeStruct((nr, 8, 128), jnp.float32)),
        grid=(nr,),
        in_specs=[resident((mp, e)),                          # emb      bf16
                  resident((8, e)),                           # Wmul^T   f32
                  resident((e, CP)),                          # Wadd     bf16
                  resident((8, e)),                           # Wadd^T   bf16
                  resident((1, CP)),                          # bias     f32
                  pl.BlockSpec((tile_r, mp), lambda r: (r, 0))],   # labels int8
        out_specs=(pl.BlockSpec((c2, tile_r, mp), lambda r: (0, r, 0)),
                   pl.BlockSpec((1, 8, 128), lambda r: (r, 0, 0))),
        compiler_params=pltpu.CompilerParams(
            dimension_semantics=("parallel",),
            vmem_limit_bytes=32 * 1024 * 1024),
    )(emb_pad, pp["pair_wmul_t"], pp["pair_wadd"], pp["pair_waddt"],
      pp["pair_b"], lab_pad)

    loss = jnp.sum(loss_part[:, 0, 0]) * jnp.float32(1.0 / n_pairs)
    return logits, loss


# ----------------------------- host-side helpers ----------------------------

def get_mention_indices(outputs_np):
    outputs_np = np.asarray(outputs_np)
    if outputs_np.ndim > 1:
        outputs_np = outputs_np.argmax(-1)
    tags = [ID2TAG[int(w)] for w in outputs_np]
    indices = []
    start, end = -1, -1
    for i, out in enumerate(tags):
        if out == "B":
            if start != -1:
                indices.append((start, end))
            start, end = i, i
        elif out == "O":
            if start != -1:
                indices.append((start, end))
            start, end = -1, -1
        else:
            end = i
    if start != -1:
        indices.append((start, end))
    return indices


def get_mention_labels(predict_indices, gold_sets):
    n = len(predict_indices)
    mat = np.zeros((n, n), dtype=np.int32)
    idx = {w: i for i, w in enumerate(predict_indices)}
    for i in range(n):
        mat[i, i] = 1
    for all_set in gold_sets:
        for gold_set in all_set:
            for m0 in gold_set:
                if m0 not in idx:
                    continue
                for m1 in gold_set:
                    if m1 not in idx:
                        continue
                    s1, s2 = idx[m0], idx[m1]
                    mat[s1, s2] = 1
                    mat[s2, s1] = 1
    return mat


# ----------------------------- parameters -----------------------------------

def init_params(key, hidden_size, hidden_size_low, output_size):
    ks = jax.random.split(key, 8)
    scale = 0.05

    def w(k, shape):
        return (scale * jax.random.normal(k, shape)).astype(jnp.float32)

    return {
        # self.linear_1 = nn.Linear(hidden_size, hidden_size_low)
        "lin1_w": w(ks[0], (hidden_size, hidden_size_low)),
        "lin1_b": w(ks[1], (1, hidden_size_low)),
        # self.mention_linear_no_pos = Linear(100,100) -> Tanh -> Dropout -> Linear(100,3)
        "mnp_w1": w(ks[2], (hidden_size_low, hidden_size_low)),
        "mnp_b1": w(ks[3], (1, hidden_size_low)),
        "mnp_w2": w(ks[4], (hidden_size_low, output_size)),
        "mnp_b2": w(ks[5], (1, output_size)),
        # self.linear = nn.Linear(hidden_size_low * 4, output_size - 1)
        "pair_w": w(ks[6], (hidden_size_low * 4, output_size - 1)),
        "pair_b": w(ks[7], (1, output_size - 1)),
    }


def pad_params(params, hidden_size_low, output_size):
    """Zero-pad weights to lane-dense widths once; the padding leaves the math
    unchanged.  Pure-matmul operands are pre-cast to bf16 (f32 accumulation
    in-kernel), which introduces the usual small bf16 drift vs the f32 reference."""
    hl = hidden_size_low
    c2 = output_size - 1

    def pad_to(a, rows, cols, dtype=jnp.float32):
        a = jnp.asarray(a, jnp.float32)
        return jnp.pad(a, ((0, rows - a.shape[0]), (0, cols - a.shape[1]))).astype(dtype)

    pp = {
        "lin1_w": pad_to(params["lin1_w"], params["lin1_w"].shape[0], HLP, jnp.bfloat16),
        "lin1_b": pad_to(params["lin1_b"], 1, HLP),
        "mnp_w1": pad_to(params["mnp_w1"], HLP, HLP, jnp.bfloat16),
        "mnp_b1": pad_to(params["mnp_b1"], 1, HLP),
        "mnp_w2": pad_to(params["mnp_w2"], HLP, CP, jnp.bfloat16),
        "mnp_b2": pad_to(params["mnp_b2"], 1, CP),
        "pair_b": pad_to(params["pair_b"], 1, CP),
    }

    # pair head: split pair_w into product / sum halves and re-lay them onto the
    # padded mention-embedding layout [HL | pad | HL | pad]  (E = 2*HLP)
    w = jnp.asarray(params["pair_w"], jnp.float32)              # (4*HL, C2)
    wmul, wadd = w[:2 * hl], w[2 * hl:]
    e = 2 * HLP
    wmul_pad = jnp.zeros((e, c2), jnp.float32)
    wmul_pad = wmul_pad.at[:hl].set(wmul[:hl]).at[HLP:HLP + hl].set(wmul[hl:])
    wadd_pad = jnp.zeros((e, CP), jnp.float32)
    wadd_pad = wadd_pad.at[:hl, :c2].set(wadd[:hl]).at[HLP:HLP + hl, :c2].set(wadd[hl:])

    pp["pair_wmul_t"] = jnp.zeros((8, e), jnp.float32).at[:c2].set(wmul_pad.T)   # (8,E) f32
    pp["pair_wadd"] = wadd_pad.astype(jnp.bfloat16)                              # (E,CP)
    pp["pair_waddt"] = (jnp.zeros((8, e), jnp.float32)
                        .at[:c2].set(wadd_pad[:, :c2].T)).astype(jnp.bfloat16)   # (8,E)
    return pp


# ----------------------------- forward pass ----------------------------------

def forward(pp, bert_output, seq_indicator, bio_labels, mention_sets, output_size):
    # output = bert(...)[0][seq_indicator.bool()]  (host boolean mask: data-dependent shape)
    out_np = np.asarray(bert_output)[np.asarray(seq_indicator).astype(bool)]
    x = jnp.asarray(out_np, dtype=jnp.bfloat16)                 # (T, H) bf16 on device
    labels_np = np.asarray(bio_labels, dtype=np.int32)
    t = x.shape[0]

    # fused: dropout(id) -> linear_1 -> mention MLP -> BIO CrossEntropy + argmax
    flat, logits, pred, losses = encode_forward(x, labels_np, pp, output_size)
    predict_output = logits[:t, :output_size].astype(jnp.float32)   # (T, 3) PyTorch layout

    # only a (T,) int vector crosses to the host for span decoding.
    # TODO(synk): this single host round-trip is inherent — the mention count M is
    #             data-dependent and fixes downstream shapes (PyTorch does the same).
    predict_tags = np.asarray(pred[:t, 0])
    predict_indices = get_mention_indices(predict_tags)
    gold_indices = get_mention_indices(labels_np)
    if len(predict_indices) == 0:
        predict_indices = gold_indices[:1]
    if len(predict_indices) == 0:
        predict_indices = [(0, 0)]            # robustness: avoid 0-mention NaN mean

    m = len(predict_indices)
    mp = max(8, _round_up(m, 8))
    if mp > 256:
        mp = _round_up(mp, 256)               # multiple of the pair-kernel row tile
    starts = np.asarray([s for s, _ in predict_indices], dtype=np.int32)
    ends = np.asarray([e for _, e in predict_indices], dtype=np.int32)

    # mention embeddings in the padded-HL layout: [flat[start] | flat[end]] -> (Mp, 2*HLP) bf16
    emb = jnp.concatenate([flat[starts], flat[ends]], axis=1)
    emb = jnp.pad(emb, ((0, mp - m), (0, 0)))

    mention_label = get_mention_labels(predict_indices, mention_sets)     # (M, M) np
    lab_pad = np.zeros((mp, mp), dtype=np.int8)                           # int8: 4x less DMA
    lab_pad[:m, :m] = mention_label
    lab_pad = jnp.asarray(lab_pad)

    # fused pairwise head + lower-triangular CrossEntropy (lane-dense (C2, Mp, Mp))
    pair_logits, pair_loss = pair_forward(emb, lab_pad, pp, m)
    mention_interaction = jnp.transpose(
        pair_logits[:, :m, :m], (1, 2, 0)).astype(jnp.float32)            # (M, M, 2)

    losses = losses + pair_loss
    labels = jnp.asarray(labels_np)
    return losses, predict_output, labels, predict_indices, mention_interaction


# ----------------------------- driver ----------------------------------------

if __name__ == "__main__":
    key = jax.random.PRNGKey(0)
    k_bert, k_params = jax.random.split(key)

    B, L, H = 2, 16, 32          # batch, seq_len, (stand-in) BERT hidden size
    HL = 100                     # hidden_size_low
    C = 3                        # config.num_labels / output_size

    params = init_params(k_params, H, HL, C)
    pp = pad_params(params, HL, C)

    # TODO(synk): stand-in for the pretrained BERT encoder output.
    bert_output = jax.random.normal(k_bert, (B, L, H), dtype=jnp.float32)

    # seq_indicator selects the first 8 tokens of each sequence -> T = 16
    seq_indicator = np.zeros((B, L), dtype=bool)
    seq_indicator[:, :8] = True

    # BIO labels for the T=16 selected tokens: B I O O repeated -> 4 gold mentions
    bio_labels = np.tile(np.array([0, 1, 2, 2], dtype=np.int32), 4)

    gold_indices = get_mention_indices(bio_labels)
    chains = [[gold_indices]]    # one coreference chain containing all gold mentions

    losses, predict_output, labels, predict_indices, mention_interaction = forward(
        pp, bert_output, seq_indicator, bio_labels, chains, C)

    jax.block_until_ready((losses, predict_output, mention_interaction))
    print("KERNEL_OK")
</pallas_src>

<mosaic_0001>
module attributes {stable_mosaic.version = 11 : i64} {
  func.func @kernel(%arg0: i32, %arg1: memref<16x32xbf16, #tpu.memory_space<vmem>>, %arg2: memref<16x1xi32, #tpu.memory_space<vmem>>, %arg3: memref<32x128xbf16, #tpu.memory_space<vmem>>, %arg4: memref<1x128xf32, #tpu.memory_space<vmem>>, %arg5: memref<128x128xbf16, #tpu.memory_space<vmem>>, %arg6: memref<1x128xf32, #tpu.memory_space<vmem>>, %arg7: memref<128x128xbf16, #tpu.memory_space<vmem>>, %arg8: memref<1x128xf32, #tpu.memory_space<vmem>>, %arg9: memref<16x128xbf16, #tpu.memory_space<vmem>>, %arg10: memref<16x128xbf16, #tpu.memory_space<vmem>>, %arg11: memref<16x1xi32, #tpu.memory_space<vmem>>, %arg12: memref<1x8x128xf32, #tpu.memory_space<vmem>>) attributes {dimension_semantics = [#tpu.dimension_semantics<parallel>], iteration_bounds = array<i64: 1>, scalar_prefetch = 0 : i64, scratch_operands = 0 : i64, tpu.core_type = #tpu.core_type<tc>, window_params = [{transform_indices = @transform_0, window_bounds = array<i64: 16, 32>}, {transform_indices = @transform_1, window_bounds = array<i64: 16, 1>}, {pipeline_mode = #tpu.pipeline_mode<synchronous>, transform_indices = @transform_2, window_bounds = array<i64: 32, 128>}, {pipeline_mode = #tpu.pipeline_mode<synchronous>, transform_indices = @transform_3, window_bounds = array<i64: 1, 128>}, {pipeline_mode = #tpu.pipeline_mode<synchronous>, transform_indices = @transform_4, window_bounds = array<i64: 128, 128>}, {pipeline_mode = #tpu.pipeline_mode<synchronous>, transform_indices = @transform_5, window_bounds = array<i64: 1, 128>}, {pipeline_mode = #tpu.pipeline_mode<synchronous>, transform_indices = @transform_6, window_bounds = array<i64: 128, 128>}, {pipeline_mode = #tpu.pipeline_mode<synchronous>, transform_indices = @transform_7, window_bounds = array<i64: 1, 128>}, {transform_indices = @transform_8, window_bounds = array<i64: 16, 128>}, {transform_indices = @transform_9, window_bounds = array<i64: 16, 128>}, {transform_indices = @transform_10, window_bounds = array<i64: 16, 1>}, {transform_indices = @transform_11, window_bounds = array<i64: 1, 8, 128>}]} {
    %c0 = arith.constant 0 : index
    %c0_0 = arith.constant 0 : index
    %0 = vector.load %arg1[%c0, %c0_0] : memref<16x32xbf16, #tpu.memory_space<vmem>>, vector<16x32xbf16>
    %c0_1 = arith.constant 0 : index
    %c0_2 = arith.constant 0 : index
    %1 = vector.load %arg3[%c0_1, %c0_2] : memref<32x128xbf16, #tpu.memory_space<vmem>>, vector<32x128xbf16>
    %cst = arith.constant dense<0.000000e+00> : vector<16x128xf32>
    %2 = tpu.matmul %0, %1, %cst {dimension_numbers = #tpu.dot_dimension_numbers<[1], [0], [0], [1], [0, 0, 1, 1], [], []>} : vector<16x32xbf16>, vector<32x128xbf16>, vector<16x128xf32> -> vector<16x128xf32>
    %c0_3 = arith.constant 0 : index
    %c0_4 = arith.constant 0 : index
    %3 = vector.load %arg4[%c0_3, %c0_4] : memref<1x128xf32, #tpu.memory_space<vmem>>, vector<1x128xf32>
    %4 = vector.broadcast %3 : vector<1x128xf32> to vector<16x128xf32>
    %5 = arith.addf %2, %4 : vector<16x128xf32>
    %6 = arith.truncf %5 : vector<16x128xf32> to vector<16x128xbf16>
    %c0_5 = arith.constant 0 : index
    %c0_6 = arith.constant 0 : index
    %7 = vector.load %arg9[%c0_5, %c0_6] : memref<16x128xbf16, #tpu.memory_space<vmem>>, vector<16x128xbf16>
    tpu.vector_store %arg9[%c0_5, %c0_6], %6 {strides = array<i32>} : memref<16x128xbf16, #tpu.memory_space<vmem>>, vector<16x128xbf16>,
    %8 = arith.truncf %5 : vector<16x128xf32> to vector<16x128xbf16>
    %c0_7 = arith.constant 0 : index
    %c0_8 = arith.constant 0 : index
    %9 = vector.load %arg5[%c0_7, %c0_8] : memref<128x128xbf16, #tpu.memory_space<vmem>>, vector<128x128xbf16>
    %cst_9 = arith.constant dense<0.000000e+00> : vector<16x128xf32>
    %10 = tpu.matmul %8, %9, %cst_9 {dimension_numbers = #tpu.dot_dimension_numbers<[1], [0], [0], [1], [0, 0, 1, 1], [], []>} : vector<16x128xbf16>, vector<128x128xbf16>, vector<16x128xf32> -> vector<16x128xf32>
    %c0_10 = arith.constant 0 : index
    %c0_11 = arith.constant 0 : index
    %11 = vector.load %arg6[%c0_10, %c0_11] : memref<1x128xf32, #tpu.memory_space<vmem>>, vector<1x128xf32>
    %12 = vector.broadcast %11 : vector<1x128xf32> to vector<16x128xf32>
    %13 = arith.addf %10, %12 : vector<16x128xf32>
    %14 = math.tanh %13 : vector<16x128xf32>
    %15 = arith.truncf %14 : vector<16x128xf32> to vector<16x128xbf16>
    %c0_12 = arith.constant 0 : index
    %c0_13 = arith.constant 0 : index
    %16 = vector.load %arg7[%c0_12, %c0_13] : memref<128x128xbf16, #tpu.memory_space<vmem>>, vector<128x128xbf16>
    %cst_14 = arith.constant dense<0.000000e+00> : vector<16x128xf32>
    %17 = tpu.matmul %15, %16, %cst_14 {dimension_numbers = #tpu.dot_dimension_numbers<[1], [0], [0], [1], [0, 0, 1, 1], [], []>} : vector<16x128xbf16>, vector<128x128xbf16>, vector<16x128xf32> -> vector<16x128xf32>
    %c0_15 = arith.constant 0 : index
    %c0_16 = arith.constant 0 : index
    %18 = vector.load %arg8[%c0_15, %c0_16] : memref<1x128xf32, #tpu.memory_space<vmem>>, vector<1x128xf32>
    %19 = vector.broadcast %18 : vector<1x128xf32> to vector<16x128xf32>
    %20 = arith.addf %17, %19 : vector<16x128xf32>
    %21 = arith.truncf %20 : vector<16x128xf32> to vector<16x128xbf16>
    %c0_17 = arith.constant 0 : index
    %c0_18 = arith.constant 0 : index
    %22 = vector.load %arg10[%c0_17, %c0_18] : memref<16x128xbf16, #tpu.memory_space<vmem>>, vector<16x128xbf16>
    tpu.vector_store %arg10[%c0_17, %c0_18], %21 {strides = array<i32>} : memref<16x128xbf16, #tpu.memory_space<vmem>>, vector<16x128xbf16>,
    %23 = tpu.iota {dimensions = array<i32: 1>} : vector<16x128xi32>
    %c3_i32 = arith.constant 3 : i32
    %24 = vector.broadcast %c3_i32 : i32 to vector<16x128xi32>
    %25 = arith.cmpi slt, %23, %24 : vector<16x128xi32>
    %cst_19 = arith.constant -1.000000e+30 : f32
    %26 = vector.broadcast %cst_19 : f32 to vector<16x128xf32>
    %27 = arith.select %25, %20, %26 : vector<16x128xi1>, vector<16x128xf32>
    %cst_20 = arith.constant dense<0xFF800000> : vector<16xf32>
    %28 = vector.multi_reduction <maximumf>, %27, %cst_20 [1] : vector<16x128xf32> to vector<16xf32>
    %29 = vector.shape_cast %28 : vector<16xf32> to vector<16x1xf32>
    %30 = vector.broadcast %29 : vector<16x1xf32> to vector<16x128xf32>
    %31 = arith.cmpf oge, %27, %30 : vector<16x128xf32>
    %32 = arith.sitofp %23 : vector<16x128xi32> to vector<16x128xf32>
    %cst_21 = arith.constant 1.280000e+02 : f32
    %33 = vector.broadcast %cst_21 : f32 to vector<16x128xf32>
    %34 = arith.select %31, %32, %33 : vector<16x128xi1>, vector<16x128xf32>
    %cst_22 = arith.constant dense<0x7F800000> : vector<16xf32>
    %35 = vector.multi_reduction <minimumf>, %34, %cst_22 [1] : vector<16x128xf32> to vector<16xf32>
    %36 = vector.shape_cast %35 : vector<16xf32> to vector<16x1xf32>
    %37 = arith.fptosi %36 : vector<16x1xf32> to vector<16x1xi32>
    %c0_23 = arith.constant 0 : index
    %c0_24 = arith.constant 0 : index
    %38 = vector.load %arg11[%c0_23, %c0_24] : memref<16x1xi32, #tpu.memory_space<vmem>>, vector<16x1xi32>
    tpu.vector_store %arg11[%c0_23, %c0_24], %37 {strides = array<i32>} : memref<16x1xi32, #tpu.memory_space<vmem>>, vector<16x1xi32>,
    %39 = vector.broadcast %29 : vector<16x1xf32> to vector<16x128xf32>
    %40 = arith.subf %27, %39 : vector<16x128xf32>
    %41 = math.exp %40 : vector<16x128xf32>
    %cst_25 = arith.constant dense<0.000000e+00> : vector<16xf32>
    %42 = vector.multi_reduction <add>, %41, %cst_25 [1] : vector<16x128xf32> to vector<16xf32>
    %43 = vector.shape_cast %42 : vector<16xf32> to vector<16x1xf32>
    %44 = math.log %43 : vector<16x1xf32>
    %45 = arith.addf %29, %44 : vector<16x1xf32>
    %c0_26 = arith.constant 0 : index
    %c0_27 = arith.constant 0 : index
    %46 = vector.load %arg2[%c0_26, %c0_27] : memref<16x1xi32, #tpu.memory_space<vmem>>, vector<16x1xi32>
    %47 = vector.broadcast %46 : vector<16x1xi32> to vector<16x128xi32>
    %48 = arith.cmpi eq, %23, %47 : vector<16x128xi32>
    %cst_28 = arith.constant 0.000000e+00 : f32
    %49 = vector.broadcast %cst_28 : f32 to vector<16x128xf32>
    %50 = arith.select %48, %20, %49 : vector<16x128xi1>, vector<16x128xf32>
    %cst_29 = arith.constant dense<0.000000e+00> : vector<16xf32>
    %51 = vector.multi_reduction <add>, %50, %cst_29 [1] : vector<16x128xf32> to vector<16xf32>
    %52 = vector.shape_cast %51 : vector<16xf32> to vector<16x1xf32>
    %c16_i32 = arith.constant 16 : i32
    %53 = arith.muli %arg0, %c16_i32 : i32
    %54 = tpu.iota {dimensions = array<i32: 0>} : vector<16x1xi32>
    %55 = vector.broadcast %53 : i32 to vector<16x1xi32>
    %56 = arith.addi %55, %54 : vector<16x1xi32>
    %c16_i32_30 = arith.constant 16 : i32
    %57 = vector.broadcast %c16_i32_30 : i32 to vector<16x1xi32>
    %58 = arith.cmpi slt, %56, %57 : vector<16x1xi32>
    %59 = arith.extui %58 : vector<16x1xi1> to vector<16x1xi32>
    %60 = arith.sitofp %59 : vector<16x1xi32> to vector<16x1xf32>
    %61 = arith.subf %45, %52 : vector<16x1xf32>
    %62 = arith.mulf %61, %60 : vector<16x1xf32>
    %63 = vector.shape_cast %62 : vector<16x1xf32> to vector<1x16x1xf32>
    %cst_31 = arith.constant dense<0.000000e+00> : vector<1xf32>
    %64 = vector.multi_reduction <add>, %63, %cst_31 [1, 2] : vector<1x16x1xf32> to vector<1xf32>
    %65 = vector.shape_cast %64 : vector<1xf32> to vector<1x1x1xf32>
    %66 = vector.extract %65[0, 0, 0] : f32 from vector<1x1x1xf32>
    %67 = vector.broadcast %66 : f32 to vector<1x8x128xf32>
    %c0_32 = arith.constant 0 : index
    %c0_33 = arith.constant 0 : index
    %c0_34 = arith.constant 0 : index
    %68 = vector.load %arg12[%c0_32, %c0_33, %c0_34] : memref<1x8x128xf32, #tpu.memory_space<vmem>>, vector<1x8x128xf32>
    tpu.vector_store %arg12[%c0_32, %c0_33, %c0_34], %67 {strides = array<i32>} : memref<1x8x128xf32, #tpu.memory_space<vmem>>, vector<1x8x128xf32>,
    return
  }
  func.func @transform_0(%arg0: i32) -> (i32, i32) {
    %c0_i32 = arith.constant 0 : i32
    %c0_i32_0 = arith.constant 0 : i32
    return %arg0, %c0_i32 : i32, i32
  }
  func.func @transform_1(%arg0: i32) -> (i32, i32) {
    %c0_i32 = arith.constant 0 : i32
    %c0_i32_0 = arith.constant 0 : i32
    return %arg0, %c0_i32 : i32, i32
  }
  func.func @transform_2(%arg0: i32) -> (i32, i32) {
    %c0_i32 = arith.constant 0 : i32
    %c0_i32_0 = arith.constant 0 : i32
    %c0_i32_1 = arith.constant 0 : i32
    return %c0_i32, %c0_i32_0 : i32, i32
  }
  func.func @transform_3(%arg0: i32) -> (i32, i32) {
    %c0_i32 = arith.constant 0 : i32
    %c0_i32_0 = arith.constant 0 : i32
    %c0_i32_1 = arith.constant 0 : i32
    return %c0_i32, %c0_i32_0 : i32, i32
  }
  func.func @transform_4(%arg0: i32) -> (i32, i32) {
    %c0_i32 = arith.constant 0 : i32
    %c0_i32_0 = arith.constant 0 : i32
    %c0_i32_1 = arith.constant 0 : i32
    return %c0_i32, %c0_i32_0 : i32, i32
  }
  func.func @transform_5(%arg0: i32) -> (i32, i32) {
    %c0_i32 = arith.constant 0 : i32
    %c0_i32_0 = arith.constant 0 : i32
    %c0_i32_1 = arith.constant 0 : i32
    return %c0_i32, %c0_i32_0 : i32, i32
  }
  func.func @transform_6(%arg0: i32) -> (i32, i32) {
    %c0_i32 = arith.constant 0 : i32
    %c0_i32_0 = arith.constant 0 : i32
    %c0_i32_1 = arith.constant 0 : i32
    return %c0_i32, %c0_i32_0 : i32, i32
  }
  func.func @transform_7(%arg0: i32) -> (i32, i32) {
    %c0_i32 = arith.constant 0 : i32
    %c0_i32_0 = arith.constant 0 : i32
    %c0_i32_1 = arith.constant 0 : i32
    return %c0_i32, %c0_i32_0 : i32, i32
  }
  func.func @transform_8(%arg0: i32) -> (i32, i32) {
    %c0_i32 = arith.constant 0 : i32
    %c0_i32_0 = arith.constant 0 : i32
    return %arg0, %c0_i32 : i32, i32
  }
  func.func @transform_9(%arg0: i32) -> (i32, i32) {
    %c0_i32 = arith.constant 0 : i32
    %c0_i32_0 = arith.constant 0 : i32
    return %arg0, %c0_i32 : i32, i32
  }
  func.func @transform_10(%arg0: i32) -> (i32, i32) {
    %c0_i32 = arith.constant 0 : i32
    %c0_i32_0 = arith.constant 0 : i32
    return %arg0, %c0_i32 : i32, i32
  }
  func.func @transform_11(%arg0: i32) -> (i32, i32, i32) {
    %c0_i32 = arith.constant 0 : i32
    %c0_i32_0 = arith.constant 0 : i32
    %c0_i32_1 = arith.constant 0 : i32
    return %arg0, %c0_i32, %c0_i32_0 : i32, i32, i32
  }
}

</mosaic_0001>

<bundles_post_ra>
// kernel: tpu_custom_call.1
= control target key start
LH: loop header
LB: loop body
LE: loop exit
PB: predicated region body
PF: predicated region fallthrough
CT: control target
= control target key end

     0   :  { %17 = vsyncpa [#allocation3], 0  ;;  %s1000_s0 = inlined_call_operand.vmem [shape: bf16[16,32], index: 0, kind: input, shape index: {}]   ;;  %s1001_s1 = inlined_call_operand.vmem [shape: s32[16,1], index: 1, kind: input, shape index: {}]   ;;  %s1002_s2 = inlined_call_operand.vmem [shape: bf16[32,128], index: 2, kind: input, shape index: {}]   ;;  %s1003_s3 = inlined_call_operand.vmem [shape: f32[1,128], index: 3, kind: input, shape index: {}]   ;;  %s1004_s4 = inlined_call_operand.hbm [shape: bf16[128,128], index: 4, kind: input, shape index: {}]   ;;  %s1005_s5 = inlined_call_operand.vmem [shape: f32[1,128], index: 5, kind: input, shape index: {}]   ;;  %s1006_s6 = inlined_call_operand.hbm [shape: bf16[128,128], index: 6, kind: input, shape index: {}]   ;;  %s1007_s7 = inlined_call_operand.vmem [shape: f32[1,128], index: 7, kind: input, shape index: {}]   ;;  %s1008_s8 = inlined_call_operand.hbm [shape: bf16[16,128], index: 8, kind: output, shape index: {0}]   ;;  %s1009_s9 = inlined_call_operand.hbm [shape: bf16[16,128], index: 9, kind: output, shape index: {1}]   ;;  %s1010_s10 = inlined_call_operand.vmem [shape: s32[16,1], index: 10, kind: output, shape index: {2}]   ;;  %s1011_s11 = inlined_call_operand.hbm [shape: f32[1,8,128], index: 11, kind: output, shape index: {3}]  }
   0x1   :  { %18 = vsyncpa [#allocation6], 0 }
   0x2   :  { %19 = vsyncpa [#allocation4], 0 }
   0x3   :  { %20 = vsyncpa [#allocation9], 0  ;;  %s800_s17 = smov [#allocation2]   ;;  %s682_s21 = scalar_lea.hbm %s1004_s4, 1024 }
   0x4   :  { %s34_s18 = sshll.u32 %s800_s17, 4  ;;  %p683_p0 = scmp.ne.s32.totalorder %s1004_s4, %s682_s21  ;;  %s35_s18 = int_to_ptr.vmem [resolvable:$true] %s34_s18 }
   0x5   :  { %p686_p1 = scmp.lt.u32.totalorder %s682_s21, %s1004_s4 }
   0x7   :  { %p688_p2 = pnand %p686_p1, %p683_p0 }
   0x9   :  { %691 = shalt.err (!%p688_p2)
}
   0xa   :  { %s692_s26 = scalar_lea.vmem %s35_s18, 1024  ;;  %p697_p4 = scmp.lt.s32.totalorder %s35_s18, %s35_s18 }
   0xb   :  { %p693_p3 = scmp.ne.s32.totalorder %s35_s18, %s692_s26  ;;  %p698_p5 = scmp.lt.s32.totalorder %s692_s26, %s692_s26 }
   0xd   :  { %p699_p6 = por %p698_p5, %p697_p4 }
   0xf   :  { %p700_p7 = pnand %p699_p6, %p693_p3 }
  0x11   :  { %703 = shalt.err (!%p700_p7)
}
  0x12   :  { %s801_s27 = smov 64   ;;  %s802_s28 = smov 4  }
  0x13   :  { %40 = dma.hbm_to_vmem [thread:$0]  %s1004_s4, 1024, %s35_s18, [#allocation3], %s801_s27, %s801_s27, %s802_s28  }
  0x14   :  { %s803_s12 = smov [#allocation5]   ;;  %s704_s16 = scalar_lea.hbm %s1006_s6, 1024 }
  0x15   :  { %s48_s13 = sshll.u32 %s803_s12, 4  ;;  %p705_p8 = scmp.ne.s32.totalorder %s1006_s6, %s704_s16  ;;  %s49_s13 = int_to_ptr.vmem [resolvable:$true] %s48_s13 }
  0x16   :  { %p708_p9 = scmp.lt.u32.totalorder %s704_s16, %s1006_s6 }
  0x18   :  { %p710_p10 = pnand %p708_p9, %p705_p8 }
  0x1a   :  { %713 = shalt.err (!%p710_p10)
}
  0x1b   :  { %s714_s22 = scalar_lea.vmem %s49_s13, 1024  ;;  %p719_p12 = scmp.lt.s32.totalorder %s49_s13, %s49_s13 }
  0x1c   :  { %p715_p11 = scmp.ne.s32.totalorder %s49_s13, %s714_s22  ;;  %p720_p13 = scmp.lt.s32.totalorder %s714_s22, %s714_s22 }
  0x1e   :  { %p721_p0 = por %p720_p13, %p719_p12 }
  0x20   :  { %p722_p1 = pnand %p721_p0, %p715_p11 }
  0x22   :  { %725 = shalt.err (!%p722_p1)
}
  0x23   :  { %54 = dma.hbm_to_vmem [thread:$0]  %s1006_s6, 1024, %s49_s13, [#allocation6], %s801_s27, %s801_s27, %s802_s28  }
  0x24   :  { %792 = dma.done.wait [#allocation3], 1024  }
  0x25   :  { %793 = vsyncadd [#allocation3], 4294966272 }
  0x26   :  { %794 = dma.done.wait [#allocation6], 1024  }
  0x27   :  { %795 = vsyncadd [#allocation6], 4294966272  ;;  %v804_v0 = vmov 0.0   ;;  %vm805_vm0 = vmmov 0   ;;  %v651_v1 = vld [vmem:[%s1002_s2] sm:$0xff]   ;;  %v652_v2 = vld [vmem:[%s1002_s2 + $0x8] sm:$0xff]   ;;  %v386_v41 = vlaneseq }
  0x28   :  { %585 = vmatprep.subr.bf16.mxu0 %v804_v0  ;;  %589 = vmatprep.mubr.msk.bf16.mxu0 %vm805_vm0, %v804_v0  ;;  %v654_v3 = vld [vmem:[#allocation2] sm:$0xff]   ;;  %v655_v5 = vld [vmem:[#allocation2 + $0x8] sm:$0xff]   ;;  %vm94_vm1 = vcmask 261120   ;;  %v656_v6 = vld [vmem:[#allocation2 + $0x10] sm:$0xff]   ;;  %v806_v29 = vmov 0   ;;  %vm406_vm5 = vcmask 7168  }
  0x29   :  { %593 = vmatprep.subr.bf16.mxu1 %v804_v0  ;;  %609 = vmatprep.mubr.msk.bf16.mxu1 %vm805_vm0, %v804_v0  ;;  %v653_v4 = vld [vmem:[%s1000_s0] sm:$0xff]   ;;  %v657_v7 = vld [vmem:[#allocation2 + $0x18] sm:$0xff]   ;;  %v659_v9 = vld [vmem:[#allocation2 + $0x28] sm:$0xff]   ;;  %v387_v42 = vand.u32 127, %v386_v41  ;;  %s808_s17 = smov [#allocation7]  }
  0x2a   :  { %586 = vmatpush3.bf16.msra.mxu0 %v651_v1  ;;  %594 = vmatpush3.bf16.msra.mxu1 %v654_v3  ;;  %v658_v8 = vld [vmem:[#allocation2 + $0x20] sm:$0xff]   ;;  %v660_v10 = vld [vmem:[#allocation2 + $0x30] sm:$0xff]   ;;  %v661_v11 = vld [vmem:[#allocation2 + $0x38] sm:$0xff]   ;;  %s477_s19 = sshll.u32 %s808_s17, 4  ;;  %s478_s19 = int_to_ptr.vmem [resolvable:$true] %s477_s19 }
  0x2b   :  { %587 = vmatprep.subr.bf16.mxu0 %v804_v0  ;;  %595 = vmatprep.subr.bf16.mxu1 %v804_v0  ;;  %v662_v12 = vld [vmem:[#allocation5] sm:$0xff]   ;;  %v663_v13 = vld [vmem:[#allocation5 + $0x8] sm:$0xff]   ;;  %v664_v14 = vld [vmem:[#allocation5 + $0x10] sm:$0xff]   ;;  %vm388_vm2 = vcmp.lt.s32.totalorder %v387_v42, 3 }
  0x2c   :  { %v665_v15 = vld [vmem:[#allocation5 + $0x18] sm:$0xff]   ;;  %v523_v16 = vld [vmem:[%s1003_s3] ss:$0 sm:$0xff]  ;;  %v667_v25 = vld [vmem:[#allocation5 + $0x28] sm:$0xff]   ;;  %649 = vset.pattern.permute.xlu1 %v806_v29  ;;  %650 = vset.pattern.permute.xlu0 %v806_v29 }
  0x2d   :  { %v666_v24 = vld [vmem:[#allocation5 + $0x20] sm:$0xff]   ;;  %v668_v26 = vld [vmem:[#allocation5 + $0x30] sm:$0xff]   ;;  %v669_v27 = vld [vmem:[#allocation5 + $0x38] sm:$0xff]  }
  0x2e   :  { %588 = vmatpush3.bf16.msra.mxu0 %v652_v2  ;;  %596 = vmatpush3.bf16.msra.mxu1 %v655_v5  ;;  %v425_v28 = vld [vmem:[%s1001_s1] sm:$0xff]  ;;  %v426_v30 = vld [vmem:[%s1001_s1 + $0x8] sm:$0xff] }
  0x2f   :  { %613 = vmatprep.subr.bf16.mxu0 %v804_v0  ;;  %597 = vmatprep.subr.bf16.mxu1 %v804_v0  ;;  %v530_v31 = vld [vmem:[%s1005_s5] ss:$0 sm:$0xff]  ;;  %s807_s5 = smov [#allocation8]  }
  0x30   :  { %428 = vperm.xlu1 %649, %v425_v28   ;;  %v539_v43 = vld [vmem:[%s1007_s7] ss:$0 sm:$0xff]  ;;  %s489_s7 = sshll.u32 %s807_s5, 4  ;;  %s490_s7 = int_to_ptr.vmem [resolvable:$true] %s489_s7 }
  0x31   :  { %590 = vmatmul.mubr.msk.bf16.vlgmr.msra.gmra.mrb[0].mxu0 %vm94_vm1, %v653_v4  ;;  %s726_s20 = scalar_lea.vmem %s490_s7, 128  ;;  %p731_p3 = scmp.lt.s32.totalorder %s490_s7, %s490_s7 }
  0x32   :  { %629 = vmatprep.mubr.msk.bf16.mxu0 %vm805_vm0, %v804_v0  ;;  %598 = vmatpush3.bf16.msra.mxu1 %v656_v6  ;;  %p727_p2 = scmp.ne.s32.totalorder %s490_s7, %s726_s20  ;;  %p732_p4 = scmp.lt.s32.totalorder %s726_s20, %s726_s20 }
  0x33   :  { %599 = vmatprep.subr.bf16.mxu1 %v804_v0  ;;  %614 = vmatpush3.bf16.msra.mxu0 %v662_v12 }
  0x34   :  { %615 = vmatprep.subr.bf16.mxu0 %v804_v0  ;;  %431 = vperm.xlu1 %649, %v426_v30   ;;  %p733_p5 = por %p732_p4, %p731_p3 }
  0x36   :  { %600 = vmatpush3.bf16.msra.mxu1 %v657_v7  ;;  %p734_p6 = pnand %p733_p5, %p727_p2 }
  0x37   :  { %601 = vmatprep.subr.bf16.mxu1 %v804_v0  ;;  %616 = vmatpush3.bf16.msra.mxu0 %v663_v13 }
  0x38   :  { %617 = vmatprep.subr.bf16.mxu0 %v804_v0 }
  0x3a   :  { %602 = vmatpush3.bf16.msra.mxu1 %v658_v8 }
  0x3b   :  { %603 = vmatprep.subr.bf16.mxu1 %v804_v0  ;;  %618 = vmatpush3.bf16.msra.mxu0 %v664_v14 }
  0x3c   :  { %619 = vmatprep.subr.bf16.mxu0 %v804_v0 }
  0x3e   :  { %604 = vmatpush3.bf16.msra.mxu1 %v659_v9 }
  0x3f   :  { %605 = vmatprep.subr.bf16.mxu1 %v804_v0  ;;  %620 = vmatpush3.bf16.msra.mxu0 %v665_v15 }
  0x40   :  { %621 = vmatprep.subr.bf16.mxu0 %v804_v0 }
  0x42   :  { %606 = vmatpush3.bf16.msra.mxu1 %v660_v10 }
  0x43   :  { %607 = vmatprep.subr.bf16.mxu1 %v804_v0  ;;  %622 = vmatpush3.bf16.msra.mxu0 %v666_v24 }
  0x44   :  { %623 = vmatprep.subr.bf16.mxu0 %v804_v0 }
  0x46   :  { %608 = vmatpush3.bf16.msra.mxu1 %v661_v11 }
  0x47   :  { %624 = vmatpush3.bf16.msra.mxu0 %v667_v25 }
  0x48   :  { %625 = vmatprep.subr.bf16.mxu0 %v804_v0 }
  0x4b   :  { %626 = vmatpush3.bf16.msra.mxu0 %v668_v26 }
  0x4c   :  { %627 = vmatprep.subr.bf16.mxu0 %v804_v0 }
  0x4f   :  { %628 = vmatpush3.bf16.msra.mxu0 %v669_v27 }
  0xaf   :  { %v429_v59 = vpop.permute.xlu1 %428 }
  0xb0   :  { %vm433_vm3 = vcmp.eq.s32.totalorder %v387_v42, %v429_v59 }
  0xb3   :  { %v432_v61 = vpop.permute.xlu1 %431 }
  0xb4   :  { %vm434_vm4 = vcmp.eq.s32.totalorder %v387_v42, %v432_v61 }
 0x104   :  { %v132_v17 = vpop.f32.mrb[0].mxu0 }
 0x105   :  { %v591_v18 = vpop.f32.mrb[1].mxu0  ;;  %v133_v20 = vadd.f32 %v523_v16, %v132_v17 }
 0x106   :  { %v135_v19 = vpop.f32.mrb[2].mxu0 }
 0x107   :  { %v136_v21 = vadd.f32 %v523_v16, %v135_v19  ;;  %v592_v22 = vpop.f32.mrb[3].mxu0  ;;  %v397_v16 = vcvt.s32.f32 %v387_v42 }
 0x109   :  { %v139_v23 = vpack.c.bf16 %v136_v21, %v133_v20 }
 0x10b   :  { %558 = vst [vmem:[#allocation7] sm:$0xff] %v139_v23   ;;  %610 = vmatmul.mubr.bf16.vlgmr.msra.gmra.mrb[0].mxu1 %v139_v23 }
 0x1de   :  { %v254_v32 = vpop.f32.mrb[0].mxu1 }
 0x1df   :  { %v255_v33 = vadd.f32 %v530_v31, %v254_v32  ;;  %v611_v34 = vpop.f32.mrb[1].mxu1 }
 0x1e0   :  { %v257_v35 = vpop.f32.mrb[2].mxu1 }
 0x1e1   :  { %v258_v36 = vadd.f32 %v530_v31, %v257_v35  ;;  %v612_v37 = vpop.f32.mrb[3].mxu1  ;;  %670 = vtanh.f32 %v255_v33 }
 0x1e3   :  { %672 = vtanh.f32 %v258_v36 }
 0x1eb   :  { %v671_v38 = vpop.eup %670 }
 0x1ed   :  { %v673_v39 = vpop.eup %672 }
 0x1ee   :  { %v263_v40 = vpack.c.bf16 %v673_v39, %v671_v38 }
 0x1f0   :  { %630 = vmatmul.mubr.bf16.vlgmr.msra.gmra.mrb[4].mxu0 %v263_v40 }
 0x2c3   :  { %v369_v44 = vpop.f32.mrb[4].mxu0 }
 0x2c4   :  { %v370_v45 = vadd.f32 %v539_v43, %v369_v44  ;;  %v631_v46 = vpop.f32.mrb[5].mxu0 }
 0x2c5   :  { %v372_v47 = vpop.f32.mrb[6].mxu0 }
 0x2c6   :  { %v373_v48 = vadd.f32 %v539_v43, %v372_v47  ;;  %v632_v49 = vpop.f32.mrb[7].mxu0  ;;  %v389_v50 = vsel %vm388_vm2, %v370_v45, -1e+30  ;;  %v435_v63 = vsel %vm433_vm3, %v370_v45, 0.0 }
 0x2c7   :  { %391 = vmax.xlane.f32.xlu0 %v389_v50 }
 0x2c8   :  { %v562_v51 = vpack.c.bf16 %v373_v48, %v370_v45  ;;  %v390_v52 = vsel %vm388_vm2, %v373_v48, -1e+30  ;;  %v436_v0 = vsel %vm434_vm4, %v373_v48, 0.0 }
 0x2ca   :  { %563 = vst [vmem:[#allocation8] sm:$0xff] %v562_v51  }
 0x2cb   :  { %393 = vmax.xlane.f32.xlu0 %v390_v52 }
 0x354   :  { %v392_v53 = vpop.xlane.xlu0 %391 }
 0x355   :  { %v409_v54 = vsub.f32 %v389_v50, %v392_v53  ;;  %vm395_vm6 = vcmp.ge.f32.partialorder %v389_v50, %v392_v53 }
 0x356   :  { %v398_v17 = vsel %vm395_vm6, %v397_v16, 128.0 }
 0x357   :  { %v411_v55 = vmul.f32 1.442695, %v409_v54 }
 0x358   :  { %v394_v56 = vpop.xlane.xlu0 %393 }
 0x359   :  { %674 = vpow2.f32 %v411_v55  ;;  %v410_v57 = vsub.f32 %v390_v52, %v394_v56  ;;  %vm396_vm7 = vcmp.ge.f32.partialorder %v390_v52, %v394_v56 }
 0x35a   :  { %v399_v18 = vsel %vm396_vm7, %v397_v16, 128.0 }
 0x35b   :  { %v413_v58 = vmul.f32 1.442695, %v410_v57 }
 0x35d   :  { %676 = vpow2.f32 %v413_v58 }
 0x363   :  { %v675_v60 = vpop.eup %674 }
 0x364   :  { %415 = vadd.xlane.f32.xlu0 %v675_v60 }
 0x367   :  { %v677_v62 = vpop.eup %676 }
 0x368   :  { %437 = vadd.xlane.f32.xlu0 %v435_v63  ;;  %417 = vadd.xlane.f32.xlu1 %v677_v62 }
 0x36c   :  { %439 = vadd.xlane.f32.xlu0 %v436_v0 }
 0x3f1   :  { %v416_v1 = vpop.xlane.xlu0 %415 }
 0x3f2   :  { %678 = vlog2.f32 %v416_v1 }
 0x3f5   :  { %v418_v2 = vpop.xlane.xlu1 %417  ;;  %v438_v5 = vpop.xlane.xlu0 %437 }
 0x3f6   :  { %680 = vlog2.f32 %v418_v2 }
 0x3f9   :  { %v440_v11 = vpop.xlane.xlu0 %439 }
 0x3fc   :  { %v679_v3 = vpop.eup %678 }
 0x3fd   :  { %v420_v4 = vmul.f32 0.6931472, %v679_v3 }
 0x3ff   :  { %v423_v6 = vadd.f32 %v420_v4, %v392_v53 }
 0x400   :  { %v681_v7 = vpop.eup %680 }
 0x401   :  { %v422_v8 = vmul.f32 0.6931472, %v681_v7  ;;  %v454_v9 = vsub.f32 %v423_v6, %v438_v5 }
 0x403   :  { %v424_v10 = vadd.f32 %v422_v8, %v394_v56  ;;  %v458_v13 = vsel %vm406_vm5, %v454_v9, 0.0 }
 0x405   :  { %v455_v12 = vsub.f32 %v424_v10, %v440_v11 }
 0x407   :  { %v459_v14 = vsel %vm406_vm5, %v455_v12, 0.0 }
 0x408   :  { %v460_v15 = vadd.f32 %v459_v14, %v458_v13 }
 0x40a   :  { %461 = vadd.xlane.f32.xlu0 %v460_v15 }
 0x40e   :  { %400 = vmin.xlane.f32.xlu0 %v398_v17 }
 0x412   :  { %402 = vmin.xlane.f32.xlu0 %v399_v18 }
 0x413   :  { %737 = shalt.err (!%p734_p6)
}
 0x414   :  { %s738_s4 = scalar_lea.hbm %s1009_s9, 128 }
 0x415   :  { %p739_p7 = scmp.ne.s32.totalorder %s1009_s9, %s738_s4  ;;  %p742_p8 = scmp.lt.u32.totalorder %s738_s4, %s1009_s9 }
 0x417   :  { %p744_p9 = pnand %p742_p8, %p739_p7 }
 0x419   :  { %747 = shalt.err (!%p744_p9)
}
 0x41a   :  { %495 = dma.vmem_to_hbm [thread:$0]  %s490_s7, 128, %s1009_s9, [#allocation9], %s801_s27, %s801_s27, %s802_s28  }
 0x41b   :  { %s748_s29 = scalar_lea.vmem %s478_s19, 128  ;;  %p753_p11 = scmp.lt.s32.totalorder %s478_s19, %s478_s19 }
 0x41c   :  { %p749_p10 = scmp.ne.s32.totalorder %s478_s19, %s748_s29  ;;  %p754_p12 = scmp.lt.s32.totalorder %s748_s29, %s748_s29 }
 0x41e   :  { %p755_p13 = por %p754_p12, %p753_p11 }
 0x420   :  { %p756_p0 = pnand %p755_p13, %p749_p10 }
 0x422   :  { %759 = shalt.err (!%p756_p0)
}
 0x423   :  { %s760_s3 = scalar_lea.hbm %s1008_s8, 128 }
 0x424   :  { %p761_p1 = scmp.ne.s32.totalorder %s1008_s8, %s760_s3  ;;  %p764_p2 = scmp.lt.u32.totalorder %s760_s3, %s1008_s8 }
 0x426   :  { %p766_p3 = pnand %p764_p2, %p761_p1 }
 0x428   :  { %769 = shalt.err (!%p766_p3)
}
 0x429   :  { %483 = dma.vmem_to_hbm [thread:$0]  %s478_s19, 128, %s1008_s8, [#allocation4], %s801_s27, %s801_s27, %s802_s28  }
 0x42a   :  { %s809_s28 = smov [#allocation10]  }
 0x42b   :  { %s504_s5 = sshll.u32 %s809_s28, 4  ;;  %s505_s5 = int_to_ptr.vmem [resolvable:$true] %s504_s5 }
 0x42c   :  { %s770_s17 = scalar_lea.vmem %s505_s5, 128  ;;  %p775_p5 = scmp.lt.s32.totalorder %s505_s5, %s505_s5 }
 0x42d   :  { %p771_p4 = scmp.ne.s32.totalorder %s505_s5, %s770_s17  ;;  %p776_p6 = scmp.lt.s32.totalorder %s770_s17, %s770_s17 }
 0x42f   :  { %p777_p7 = por %p776_p6, %p775_p5 }
 0x431   :  { %p778_p8 = pnand %p777_p7, %p771_p4 }
 0x497   :  { %v462_v19 = vpop.xlane.xlu0 %461 }
 0x498   :  { %v463_v20 = vrot.slane %v462_v19, 4 }
 0x49a   :  { %v464_v21 = vadd.f32 %v463_v20, %v462_v19 }
 0x49b   :  { %v401_v22 = vpop.xlane.xlu0 %400 }
 0x49c   :  { %v465_v23 = vrot.slane %v464_v21, 2  ;;  %v633_v24 = vtrunc.f32 %v401_v22 }
 0x49e   :  { %v634_v25 = vcvt.f32.s32 %v633_v24  ;;  %v466_v26 = vadd.f32 %v465_v23, %v464_v21 }
 0x49f   :  { %v403_v27 = vpop.xlane.xlu0 %402 }
 0x4a0   :  { %407 = vst.msk [vmem:[%s1010_s10] sm:$0xff] %vm406_vm5, %v634_v25  ;;  %v635_v28 = vtrunc.f32 %v403_v27  ;;  %v467_v29 = vrot.slane %v466_v26, 1 }
 0x4a2   :  { %v636_v30 = vcvt.f32.s32 %v635_v28  ;;  %v468_v31 = vadd.f32 %v467_v29, %v466_v26 }
 0x4a4   :  { %408 = vst.msk [vmem:[%s1010_s10 + $0x8] sm:$0xff] %vm406_vm5, %v636_v30 }
 0x4a5   :  { %637 = vpush %v468_v31 }
 0x4d6   :  { %s638_s7 = spop %637 }
 0x4d7   :  { %v470_v32 = vstv %s638_s7 }
 0x4d8   :  { %471 = vst [vmem:[#allocation10] sm:$0xff] %v470_v32 }
 0x4d9   :  { %781 = shalt.err (!%p778_p8)
}
 0x4da   :  { %s782_s21 = scalar_lea.hbm %s1011_s11, 128 }
 0x4db   :  { %p783_p9 = scmp.ne.s32.totalorder %s1011_s11, %s782_s21  ;;  %p786_p10 = scmp.lt.u32.totalorder %s782_s21, %s1011_s11 }
 0x4dd   :  { %p788_p11 = pnand %p786_p10, %p783_p9 }
 0x4df   :  { %791 = shalt.err (!%p788_p11)
}
 0x4e0   :  { %507 = dma.vmem_to_hbm [thread:$0]  %s505_s5, 128, %s1011_s11, [#allocation9]  }
 0x4e1   :  { %796 = dma.done.wait [#allocation4], 128  }
 0x4e2   :  { %797 = vsyncadd [#allocation4], 4294967168 }
 0x4e3   :  { %798 = dma.done.wait [#allocation9], 256  }
 0x4e4   :  { %799 = vsyncadd [#allocation9], 4294967040 }
 0x4e5   :  { %519 = vsyncpa [#allocation3], 1 }
 0x4e6   :  { %520 = vsyncpa [#allocation6], 1 }
 0x4e7   :  { %521 = vsyncpa [#allocation4], 1 }
 0x4e8   :  { %522 = vsyncpa [#allocation9], 1 }

</bundles_post_ra>
